<compile_context>
chip_gen: v5e
topology: v5e:2x2
jax: 0.10.0
libtpu: 0.0.40
codegen_flags: <defaults>
</compile_context>

<pallas_src>
import functools

import jax
import jax.numpy as jnp
from jax.experimental import pallas as pl
from jax.experimental.pallas import tpu as pltpu


# ----------------------------- Pallas kernel --------------------------------

def _layer_centering_kernel(x_ref, eps_ref, o_ref, *, groups, seg):
    # x_ref:   (tm, groups*seg) tile of (possibly lane-packed) rows, native dtype
    # eps_ref: (1, groups*seg)  epsilon (tiled `groups` times), float32
    # o_ref:   (tm, groups*seg) output tile, native dtype
    x = x_ref[...].astype(jnp.float32)
    eps = eps_ref[...]
    tm = x.shape[0]
    if groups > 1:
        # Segmented mean: each lane-packed row holds `groups` original rows of
        # width `seg`; reduce each segment independently.
        xw = x.reshape(tm, groups, seg)
        mean = jnp.mean(xw, axis=-1, keepdims=True)           # (tm, groups, 1)
        centered = (xw - mean).reshape(tm, groups * seg)
    else:
        mean = jnp.mean(x, axis=-1, keepdims=True)            # (tm, 1)
        centered = x - mean
    o_ref[...] = (centered + eps).astype(o_ref.dtype)


def _round_up(v, m):
    return ((v + m - 1) // m) * m


def layer_centering_forward(x, epsilon, *,
                            vmem_budget_bytes=24 * 1024 * 1024,
                            vmem_limit_bytes=48 * 1024 * 1024):
    """x: (B, N, D) any float dtype, epsilon: (D,) -> (B, N, D) in x.dtype."""
    B, N, D = x.shape
    M = B * N
    dtype = x.dtype
    bytes_el = jnp.dtype(dtype).itemsize

    # ---- lane packing for small D (keep stores lane-dense / unmasked) ----
    if D < 128 and 128 % D == 0 and M % (128 // D) == 0:
        g = 128 // D
    else:
        g = 1
    Mg = M // g                      # packed row count
    Dg = D * g                       # packed row width (lane dim)

    x_flat = x.reshape(Mg, Dg)       # pure metadata reshape, no copy
    eps_row = epsilon.reshape(1, D).astype(jnp.float32)
    if g > 1:
        eps_row = jnp.tile(eps_row, (1, g))                   # (1, Dg)

    # ---- VMEM-aware row tile ----
    # Per grid step the pipeline holds 2 input buffers + 2 output buffers.
    sublane = 8 * max(1, 4 // bytes_el)                       # 8 f32 / 16 bf16 rows
    lane_pad = _round_up(Dg, 128)                             # VMEM lane padding
    per_row_bytes = 4 * lane_pad * bytes_el                   # 2*in + 2*out
    tm = vmem_budget_bytes // per_row_bytes
    tm = max(sublane, min(512, (tm // sublane) * sublane))
    tm = min(tm, _round_up(Mg, sublane))                      # don't exceed problem

    grid = (pl.cdiv(Mg, tm),)

    cost = pl.CostEstimate(
        flops=3 * M * D,                                      # sum + subtract + add
        transcendentals=0,
        bytes_accessed=2 * M * D * bytes_el + D * 4,
    )

    kernel = functools.partial(_layer_centering_kernel, groups=g, seg=D)

    out_flat = pl.pallas_call(
        kernel,
        out_shape=jax.ShapeDtypeStruct((Mg, Dg), dtype),
        grid_spec=pltpu.PrefetchScalarGridSpec(
            num_scalar_prefetch=0,
            grid=grid,
            in_specs=[
                pl.BlockSpec((tm, Dg), lambda i: (i, 0)),
                pl.BlockSpec((1, Dg), lambda i: (0, 0)),      # constant: fetched once
            ],
            out_specs=pl.BlockSpec((tm, Dg), lambda i: (i, 0)),
        ),
        compiler_params=pltpu.CompilerParams(
            dimension_semantics=("parallel",),
            vmem_limit_bytes=vmem_limit_bytes,
        ),
        cost_estimate=cost,
    )(x_flat, eps_row)

    return out_flat.reshape(B, N, D)


# ----------------------------------- main ------------------------------------

if __name__ == "__main__":
    key = jax.random.PRNGKey(0)
    k1, k2, k3, k4 = jax.random.split(key, 4)

    # --- test 1: small D (d=32) -> exercises the lane-packing path, f32 ---
    B, N, d = 2, 8, 32
    x = jax.random.normal(k1, (B, N, d), jnp.float32)
    epsilon = 0.1 * jax.random.normal(k2, (d,), jnp.float32)

    out = jax.block_until_ready(layer_centering_forward(x, epsilon))
    out_ref = x - x.mean(axis=2, keepdims=True) + epsilon[None, None, :]
    assert out.shape == (B, N, d)
    assert out.dtype == x.dtype
    assert jnp.allclose(out, out_ref, atol=1e-5, rtol=1e-5)

    # --- test 2: D >= 128, bf16 input -> exercises native-dtype streaming ---
    B2, N2, d2 = 2, 8, 256
    x2_f32 = jax.random.normal(k3, (B2, N2, d2), jnp.float32)
    x2 = x2_f32.astype(jnp.bfloat16)
    eps2 = 0.1 * jax.random.normal(k4, (d2,), jnp.float32)

    out2 = jax.block_until_ready(layer_centering_forward(x2, eps2))
    x2f = x2.astype(jnp.float32)
    out2_ref = x2f - x2f.mean(axis=2, keepdims=True) + eps2[None, None, :]
    assert out2.shape == (B2, N2, d2)
    assert out2.dtype == jnp.bfloat16
    assert jnp.allclose(out2.astype(jnp.float32), out2_ref, atol=2e-2, rtol=2e-2)

    print("KERNEL_OK")
</pallas_src>

<mosaic_0001>
module attributes {stable_mosaic.version = 11 : i64} {
  func.func @_layer_centering_kernel(%arg0: i32, %arg1: memref<8x128xf32, #tpu.memory_space<vmem>>, %arg2: memref<1x128xf32, #tpu.memory_space<vmem>>, %arg3: memref<8x128xf32, #tpu.memory_space<vmem>>) attributes {dimension_semantics = [#tpu.dimension_semantics<parallel>], iteration_bounds = array<i64: 1>, scalar_prefetch = 0 : i64, scratch_operands = 0 : i64, tpu.core_type = #tpu.core_type<tc>, window_params = [{transform_indices = @transform_0, window_bounds = array<i64: 8, 128>}, {pipeline_mode = #tpu.pipeline_mode<synchronous>, transform_indices = @transform_1, window_bounds = array<i64: 1, 128>}, {transform_indices = @transform_2, window_bounds = array<i64: 8, 128>}]} {
    %c0 = arith.constant 0 : index
    %c0_0 = arith.constant 0 : index
    %0 = vector.load %arg1[%c0, %c0_0] : memref<8x128xf32, #tpu.memory_space<vmem>>, vector<8x128xf32>
    %c0_1 = arith.constant 0 : index
    %c0_2 = arith.constant 0 : index
    %1 = vector.load %arg2[%c0_1, %c0_2] : memref<1x128xf32, #tpu.memory_space<vmem>>, vector<1x128xf32>
    %2 = vector.shape_cast %0 : vector<8x128xf32> to vector<8x4x32xf32>
    %cst = arith.constant dense<0.000000e+00> : vector<8x4xf32>
    %3 = vector.multi_reduction <add>, %2, %cst [2] : vector<8x4x32xf32> to vector<8x4xf32>
    %4 = vector.shape_cast %3 : vector<8x4xf32> to vector<8x4x1xf32>
    %cst_3 = arith.constant 3.200000e+01 : f32
    %5 = vector.broadcast %cst_3 : f32 to vector<8x4x1xf32>
    %6 = arith.divf %4, %5 : vector<8x4x1xf32>
    %7 = vector.broadcast %6 : vector<8x4x1xf32> to vector<8x4x32xf32>
    %8 = arith.subf %2, %7 : vector<8x4x32xf32>
    %9 = vector.shape_cast %8 : vector<8x4x32xf32> to vector<8x128xf32>
    %10 = vector.broadcast %1 : vector<1x128xf32> to vector<8x128xf32>
    %11 = arith.addf %9, %10 : vector<8x128xf32>
    %c0_4 = arith.constant 0 : index
    %c0_5 = arith.constant 0 : index
    %12 = vector.load %arg3[%c0_4, %c0_5] : memref<8x128xf32, #tpu.memory_space<vmem>>, vector<8x128xf32>
    tpu.vector_store %arg3[%c0_4, %c0_5], %11 {strides = array<i32>} : memref<8x128xf32, #tpu.memory_space<vmem>>, vector<8x128xf32>,
    return
  }
  func.func @transform_0(%arg0: i32) -> (i32, i32) {
    %c0_i32 = arith.constant 0 : i32
    %c0_i32_0 = arith.constant 0 : i32
    return %arg0, %c0_i32 : i32, i32
  }
  func.func @transform_1(%arg0: i32) -> (i32, i32) {
    %c0_i32 = arith.constant 0 : i32
    %c0_i32_0 = arith.constant 0 : i32
    %c0_i32_1 = arith.constant 0 : i32
    return %c0_i32, %c0_i32_0 : i32, i32
  }
  func.func @transform_2(%arg0: i32) -> (i32, i32) {
    %c0_i32 = arith.constant 0 : i32
    %c0_i32_0 = arith.constant 0 : i32
    return %arg0, %c0_i32 : i32, i32
  }
}

</mosaic_0001>

<bundles_post_ra>
// kernel: tpu_custom_call.1
= control target key start
LH: loop header
LB: loop body
LE: loop exit
PB: predicated region body
PF: predicated region fallthrough
CT: control target
= control target key end

     0   :  { %7 = vsyncpa [#allocation3], 0  ;;  %s456_s0 = inlined_call_operand.hbm [shape: f32[4,128], index: 0, kind: input, shape index: {}]   ;;  %s457_s1 = inlined_call_operand.hbm [shape: f32[1,128], index: 1, kind: input, shape index: {}]   ;;  %s458_s2 = inlined_call_operand.hbm [shape: f32[4,128], index: 2, kind: output, shape index: {}]  }
   0x1   :  { %8 = vsyncpa [#allocation6], 0 }
   0x2   :  { %9 = vsyncpa [#allocation4], 0 }
   0x3   :  { %13 = vsyncadd [#allocation3], 64  ;;  %s14_s11 = sshll.u32 %s456_s0, 4  ;;  %s349_s12 = smov [#allocation2]   ;;  %s15_s11 = int_to_ptr.hbm [resolvable:$true] %s14_s11 }
   0x4   :  { %s16_s13 = sshll.u32 %s349_s12, 4  ;;  %s28_s16 = sshll.u32 %s457_s1, 4  ;;  %s17_s13 = int_to_ptr.vmem [resolvable:$true] %s16_s13  ;;  %s29_s16 = int_to_ptr.hbm [resolvable:$true] %s28_s16 }
   0x5   :  { %s350_s17 = smov 64   ;;  %s351_s18 = smov 4  }
   0x6   :  { %22 = dma.hbm_to_vmem [thread:$0]  %s15_s11, 64, %s17_s13, [#allocation3], %s350_s17, %s350_s17, %s351_s18  }
   0x7   :  { %s352_s19 = smov [#allocation5]  }
   0x8   :  { %s30_s20 = sshll.u32 %s352_s19, 4  ;;  %s31_s20 = int_to_ptr.vmem [resolvable:$true] %s30_s20 }
   0x9   :  { %33 = dma.hbm_to_vmem [thread:$0]  %s29_s16, 16, %s31_s20, [#allocation6]  }
   0xa   :  { %343 = dma.done.wait [#allocation3], 128  }
   0xb   :  { %344 = vsyncadd [#allocation3], 4294967168 }
   0xc   :  { %345 = dma.done.wait [#allocation6], 16  }
   0xd   :  { %346 = vsyncadd [#allocation6], 4294967280  ;;  %v42_v0 = vld [vmem:[#allocation2] sm:$0xff]  ;;  %s353_s0 = smov 96   ;;  %s354_s1 = smov 32   ;;  %vm55_vm0 = vcmask 1047556  }
   0xe   :  { %48 = vrot.lane.b32.xlu0 %v42_v0, %s350_s17  ;;  %45 = vrot.lane.b32.xlu1 %v42_v0, %s353_s0  ;;  %v355_v1 = vmov 1983009808   ;;  %v57_v3 = vrot.slane %v42_v0, 4  ;;  %v356_v11 = vmov 1934713408   ;;  %vm111_vm1 = vcmask 257024  }
   0xf   :  { %v60_v2 = vunpack.c.l.s4 %v355_v1  ;;  %v84_v12 = vunpack.c.l.s4 %v356_v11  ;;  %v357_v50 = vmov 32.0   ;;  %vm227_vm3 = vcmask 261120  }
  0x10   :  { %269 = vrcp.f32 %v357_v50  ;;  %vm229_vm4 = vcmask 523264   ;;  %vm231_vm5 = vcmask 785408  }
  0x11   :  { %v386_v6 = vunpack.c.0.s8 %v60_v2  ;;  %v393_v18 = vunpack.c.0.s8 %v84_v12 }
  0x16   :  { %51 = vrot.lane.b32.xlu0 %v42_v0, %s354_s1  ;;  %v270_v52 = vpop.eup %269 }
  0x17   :  { %v137_v53 = vmul.f32 32.0, %v270_v52  ;;  %vm141_vm2 = vweird.f32 %v270_v52 }
  0x19   :  { %v138_v55 = vsub.f32 1.0, %v137_v53 }
  0x1b   :  { %v139_v56 = vmul.f32 %v270_v52, %v138_v55 }
  0x1d   :  { %v140_v58 = vadd.f32 %v270_v52, %v139_v56 }
  0x1f   :  { %v142_v60 = vsel %vm141_vm2, %v270_v52, %v140_v58 }
  0x80   :  { %v49_v4 = vpop.permute.xlu0 %48  ;;  %v46_v7 = vpop.permute.xlu1 %45 }
  0x81   :  { %v54_v5 = vrot.slane %v49_v4, 4  ;;  %v58_v8 = vsel %vm55_vm0, %v49_v4, %v57_v3  ;;  %v69_v10 = vrot.slane %v46_v7, 4 }
  0x82   :  { %v66_v13 = vperm.slane %v58_v8, %v386_v6 }
  0x83   :  { %v56_v9 = vsel %vm55_vm0, %v54_v5, %v42_v0 }
  0x84   :  { %v62_v14 = vperm.slane %v56_v9, %v386_v6  ;;  %v93_v19 = vrot.slane %v66_v13, 4 }
  0x86   :  { %v81_v22 = vrot.slane %v62_v14, 4 }
  0x88   :  { %v52_v15 = vpop.permute.xlu0 %51 }
  0x89   :  { %v67_v16 = vrot.slane %v52_v15, 4  ;;  %v70_v17 = vsel %vm55_vm0, %v52_v15, %v69_v10 }
  0x8a   :  { %v78_v20 = vperm.slane %v70_v17, %v386_v6 }
  0x8b   :  { %v68_v21 = vsel %vm55_vm0, %v67_v16, %v46_v7 }
  0x8c   :  { %v74_v23 = vperm.slane %v68_v21, %v386_v6  ;;  %v94_v24 = vsel %vm55_vm0, %v78_v20, %v93_v19  ;;  %v91_v33 = vrot.slane %v78_v20, 4 }
  0x8d   :  { %v400_v25 = vperm.slane %v94_v24, %v393_v18 }
  0x8e   :  { %v82_v26 = vsel %vm55_vm0, %v74_v23, %v81_v22  ;;  %v92_v37 = vsel %vm55_vm0, %v91_v33, %v66_v13  ;;  %v79_v39 = vrot.slane %v74_v23, 4 }
  0x8f   :  { %v130_v27 = vsel %vm111_vm1, %v400_v25, 0.0  ;;  %v90_v28 = vperm.slane %v82_v26, %v393_v18  ;;  %v109_v29 = vrot.slane %v400_v25, 4  ;;  %v98_v38 = vperm.slane %v92_v37, %v393_v18 }
  0x90   :  { %131 = vadd.xlane.f32.xlu2 %v130_v27  ;;  %v80_v41 = vsel %vm55_vm0, %v79_v39, %v62_v14 }
  0x91   :  { %v118_v30 = vsel %vm111_vm1, %v90_v28, 0.0  ;;  %v105_v31 = vrot.slane %v90_v28, 4  ;;  %v411_v35 = vsel %vm55_vm0, 0.0, %v109_v29  ;;  %v124_v40 = vsel %vm111_vm1, %v98_v38, 0.0 }
  0x92   :  { %119 = vadd.xlane.f32.xlu0 %v118_v30  ;;  %v133_v36 = vsel %vm111_vm1, %v411_v35, 0.0  ;;  %v86_v42 = vperm.slane %v80_v41, %v393_v18  ;;  %v107_v47 = vrot.slane %v98_v38, 4 }
  0x93   :  { %v106_v32 = vsel %vm55_vm0, 0.0, %v105_v31 }
  0x94   :  { %v121_v34 = vsel %vm111_vm1, %v106_v32, 0.0  ;;  %v112_v43 = vsel %vm111_vm1, %v86_v42, 0.0  ;;  %v103_v44 = vrot.slane %v86_v42, 4  ;;  %v108_v48 = vsel %vm55_vm0, 0.0, %v107_v47 }
  0x95   :  { %122 = vadd.xlane.f32.xlu1 %v121_v34  ;;  %v127_v49 = vsel %vm111_vm1, %v108_v48, 0.0 }
  0x96   :  { %v104_v45 = vsel %vm55_vm0, 0.0, %v103_v44 }
  0x97   :  { %v115_v46 = vsel %vm111_vm1, %v104_v45, 0.0 }
  0x98   :  { %134 = vadd.xlane.f32.xlu2 %v133_v36 }
  0xa0   :  { %125 = vadd.xlane.f32.xlu2 %v124_v40 }
  0xa8   :  { %113 = vadd.xlane.f32.xlu2 %v112_v43 }
  0xb0   :  { %116 = vadd.xlane.f32.xlu2 %v115_v46 }
  0xb8   :  { %128 = vadd.xlane.f32.xlu2 %v127_v49 }
 0x103   :  { %v132_v51 = vpop.xlane.xlu2 %131 }
 0x104   :  { %v149_v3 = vmul.f32 %v142_v60, %v132_v51  ;;  %v268_v51 = vld [vmem:[#allocation5] ss:$0 sm:$0xff] }
 0x105   :  { %v120_v59 = vpop.xlane.xlu0 %119 }
 0x106   :  { %v145_v61 = vmul.f32 %v142_v60, %v120_v59  ;;  %v157_v10 = vsub.f32 %v400_v25, %v149_v3 }
 0x108   :  { %v123_v62 = vpop.xlane.xlu1 %122  ;;  %v153_v1 = vsub.f32 %v90_v28, %v145_v61  ;;  %v171_v19 = vrot.slane %v157_v10, 4 }
 0x109   :  { %v146_v2 = vmul.f32 %v142_v60, %v123_v62 }
 0x10a   :  { %v159_v5 = vrot.slane %v153_v1, 4 }
 0x10b   :  { %v135_v54 = vpop.xlane.xlu2 %134  ;;  %v154_v7 = vsub.f32 %v106_v32, %v146_v2 }
 0x10c   :  { %v150_v14 = vmul.f32 %v142_v60, %v135_v54 }
 0x10d   :  { %v165_v13 = vrot.slane %v154_v7, 4 }
 0x10e   :  { %v158_v22 = vsub.f32 %v411_v35, %v150_v14 }
 0x110   :  { %v177_v30 = vrot.slane %v158_v22, 4 }
 0x113   :  { %v126_v57 = vpop.xlane.xlu2 %125 }
 0x114   :  { %v147_v8 = vmul.f32 %v142_v60, %v126_v57 }
 0x116   :  { %v155_v15 = vsub.f32 %v98_v38, %v147_v8 }
 0x118   :  { %v172_v23 = vsel %vm55_vm0, %v171_v19, %v155_v15 }
 0x119   :  { %v176_v28 = vperm.slane %v172_v23, %v386_v6 }
 0x11b   :  { %v114_v63 = vpop.xlane.xlu2 %113  ;;  %v197_v36 = vrot.slane %v176_v28, 4 }
 0x11c   :  { %v143_v0 = vmul.f32 %v142_v60, %v114_v63 }
 0x11e   :  { %v151_v4 = vsub.f32 %v86_v42, %v143_v0 }
 0x120   :  { %v160_v11 = vsel %vm55_vm0, %v159_v5, %v151_v4 }
 0x121   :  { %v164_v17 = vperm.slane %v160_v11, %v386_v6 }
 0x123   :  { %v117_v9 = vpop.xlane.xlu2 %116  ;;  %v185_v24 = vrot.slane %v164_v17, 4 }
 0x124   :  { %v144_v12 = vmul.f32 %v142_v60, %v117_v9 }
 0x126   :  { %v152_v16 = vsub.f32 %v104_v45, %v144_v12 }
 0x128   :  { %v166_v20 = vsel %vm55_vm0, %v165_v13, %v152_v16 }
 0x129   :  { %v170_v21 = vperm.slane %v166_v20, %v386_v6 }
 0x12b   :  { %v183_v25 = vrot.slane %v170_v21, 4  ;;  %v129_v26 = vpop.xlane.xlu2 %128  ;;  %v186_v29 = vsel %vm55_vm0, %v170_v21, %v185_v24 }
 0x12c   :  { %v148_v27 = vmul.f32 %v142_v60, %v129_v26  ;;  %v194_v34 = vperm.slane %v186_v29, %v393_v18 }
 0x12d   :  { %v184_v32 = vsel %vm55_vm0, %v183_v25, %v164_v17 }
 0x12e   :  { %v156_v31 = vsub.f32 %v108_v48, %v148_v27  ;;  %v190_v37 = vperm.slane %v184_v32, %v393_v18  ;;  %v213_v41 = vrot.slane %v194_v34, 4 }
 0x130   :  { %v178_v33 = vsel %vm55_vm0, %v177_v30, %v156_v31  ;;  %v209_v46 = vrot.slane %v190_v37, 4 }
 0x131   :  { %v182_v35 = vperm.slane %v178_v33, %v386_v6 }
 0x133   :  { %v195_v38 = vrot.slane %v182_v35, 4  ;;  %v198_v39 = vsel %vm55_vm0, %v182_v35, %v197_v36 }
 0x134   :  { %v206_v40 = vperm.slane %v198_v39, %v393_v18 }
 0x135   :  { %v196_v42 = vsel %vm55_vm0, %v195_v38, %v176_v28 }
 0x136   :  { %v214_v43 = vsel %vm55_vm0, %v206_v40, %v213_v41  ;;  %v211_v44 = vrot.slane %v206_v40, 4  ;;  %v202_v45 = vperm.slane %v196_v42, %v393_v18 }
 0x137   :  { %224 = vrot.lane.b32.xlu0 %v214_v43, %s353_s0 }
 0x138   :  { %v212_v6 = vsel %vm55_vm0, %v211_v44, %v194_v34  ;;  %v210_v47 = vsel %vm55_vm0, %v202_v45, %v209_v46  ;;  %v207_v48 = vrot.slane %v202_v45, 4 }
 0x139   :  { %220 = vrot.lane.b32.xlu1 %v212_v6, %s350_s17  ;;  %216 = vrot.lane.b32.xlu2 %v210_v47, %s354_s1 }
 0x13a   :  { %v208_v49 = vsel %vm55_vm0, %v207_v48, %v190_v37 }
 0x193   :  { %v217_v50 = vpop.permute.xlu2 %216 }
 0x194   :  { %v228_v18 = vsel %vm227_vm3, %v208_v49, %v217_v50 }
 0x1a9   :  { %v225_v53 = vpop.permute.xlu0 %224 }
 0x1ab   :  { %v221_v52 = vpop.permute.xlu1 %220 }
 0x1ac   :  { %v230_v54 = vsel %vm229_vm4, %v228_v18, %v221_v52 }
 0x1ad   :  { %v232_v55 = vsel %vm231_vm5, %v230_v54, %v225_v53 }
 0x1ae   :  { %v236_v56 = vadd.f32 %v268_v51, %v232_v55 }
 0x1b0   :  { %237 = vst [vmem:[#allocation7] sm:$0xff] %v236_v56 }
 0x1b1   :  { %241 = vsyncadd [#allocation4], 64  ;;  %s244_s23 = sshll.u32 %s458_s2, 4  ;;  %s358_s24 = smov [#allocation7]   ;;  %s245_s23 = int_to_ptr.hbm [resolvable:$true] %s244_s23 }
 0x1b2   :  { %s242_s25 = sshll.u32 %s358_s24, 4  ;;  %s243_s25 = int_to_ptr.vmem [resolvable:$true] %s242_s25 }
 0x1b3   :  { %250 = dma.vmem_to_hbm [thread:$0]  %s243_s25, 64, %s245_s23, [#allocation4], %s350_s17, %s350_s17, %s351_s18  }
 0x1b4   :  { %347 = dma.done.wait [#allocation4], 128  }
 0x1b5   :  { %348 = vsyncadd [#allocation4], 4294967168 }
 0x1b6   :  { %255 = vsyncpa [#allocation3], 1 }
 0x1b7   :  { %256 = vsyncpa [#allocation6], 1 }
 0x1b8   :  { %257 = vsyncpa [#allocation4], 1 }

</bundles_post_ra>
